<compile_context>
chip_gen: v6e
topology: v6e:2x2x1
jax: 0.10.0
libtpu: 0.0.40
codegen_flags: <defaults>
</compile_context>

<pallas_src>
import math

import numpy as np

import jax
import jax.numpy as jnp
from jax.experimental import pallas as pl
from jax.experimental.pallas import tpu as pltpu


def _kernel(t_ref, tab_ref, o_ref):
    # t_ref:   (TB, 1)  raw timesteps (int or float)
    # tab_ref: (2, dim) constant table: row 0 = scaled freqs (dup over halves),
    #                                   row 1 = phase (0 | pi/2)
    t = t_ref[...].astype(jnp.float32)          # (TB, 1)
    tab = tab_ref[...]                          # (2, dim)
    freq = tab[0:1, :]                          # (1, dim)
    phase = tab[1:2, :]                         # (1, dim)
    # sin-half and cos-half in one transcendental pass: cos(x) = sin(x + pi/2)
    o_ref[...] = jnp.sin(t * freq + phase).astype(o_ref.dtype)


def _sublane(dtype) -> int:
    """Sublane multiple required for packed dtypes (f32:8, bf16:16, int8:32)."""
    return {4: 8, 2: 16, 1: 32}[jnp.dtype(dtype).itemsize]


def _choose_tiling(B: int, dim: int, out_dtype):
    """Pick a batch tile tb (multiple of the sublane count) and padded batch."""
    sub = _sublane(out_dtype)
    out_bytes = jnp.dtype(out_dtype).itemsize
    # Keep the double-buffered output block (+ timestep input block) well under
    # the smallest per-generation scoped-VMEM default (16 MiB on v5e; 32 MiB on
    # v6e/v7x, 64 MiB physical on v7x).
    budget = 16 * 1024 * 1024
    per_row = 2 * (dim * out_bytes + 4)
    cap = max(sub, min(1024, budget // max(per_row, 1)))
    cap = (cap // sub) * sub
    if B <= cap:
        tb = -(-B // sub) * sub          # small batch: one sublane-aligned tile
    else:
        tb = cap                         # large batch: big tiles, many grid steps
    b_pad = -(-B // tb) * tb
    return tb, b_pad


def sinusoidal_pos_emb(t, *, num_steps, dim, rescale_steps=4000.0,
                       out_dtype=jnp.float32):
    """Pallas implementation of SinusoidalPosEmb.forward. t: (B,) int/float."""
    assert dim % 2 == 0, "SinusoidalPosEmb requires an even `dim`"
    B = t.shape[0]
    half = dim // 2
    denom = max(half - 1, 1)             # guard dim == 2 edge case

    # Host-side (numpy) constant table; the timestep rescale is folded into the
    # frequencies so the kernel does zero per-element scaling work.
    freqs = np.exp(np.arange(half, dtype=np.float64)
                   * -(math.log(10000.0) / denom))
    freqs = freqs * (float(rescale_steps) / float(num_steps))
    table = np.stack(
        [np.concatenate([freqs, freqs]),
         np.concatenate([np.zeros(half), np.full(half, math.pi / 2.0)])]
    ).astype(np.float32)                                              # (2, dim)

    tb, b_pad = _choose_tiling(B, dim, out_dtype)
    t2 = t.reshape(B, 1)
    if b_pad != B:
        t2 = jnp.pad(t2, ((0, b_pad - B), (0, 0)))                    # pad rows
    grid = (b_pad // tb,)

    out = pl.pallas_call(
        _kernel,
        out_shape=jax.ShapeDtypeStruct((b_pad, dim), out_dtype),
        grid=grid,
        in_specs=[
            pl.BlockSpec((tb, 1), lambda i: (i, 0)),      # per-tile timesteps
            pl.BlockSpec((2, dim), lambda i: (0, 0)),     # replicated const table
        ],
        out_specs=pl.BlockSpec((tb, dim), lambda i: (i, 0)),
        compiler_params=pltpu.CompilerParams(
            dimension_semantics=("parallel",)),
    )(t2, jnp.asarray(table))

    return out[:B] if b_pad != B else out


def sinusoidal_pos_emb_ref(t, *, num_steps, dim, rescale_steps=4000.0):
    """Pure-JAX reference reproducing the PyTorch forward."""
    t = t.astype(jnp.float32) / float(num_steps) * float(rescale_steps)
    half = dim // 2
    scale = math.log(10000.0) / max(half - 1, 1)
    freqs = jnp.exp(jnp.arange(half, dtype=jnp.float32) * -scale)
    args = t[:, None] * freqs[None, :]
    return jnp.concatenate([jnp.sin(args), jnp.cos(args)], axis=-1)


if __name__ == "__main__":
    B, dim = 2, 32
    num_steps = 1000

    key = jax.random.PRNGKey(0)
    timestep = jax.random.randint(key, (B,), 0, num_steps)

    out = sinusoidal_pos_emb(timestep, num_steps=num_steps, dim=dim)
    out = jax.block_until_ready(out)
    ref = sinusoidal_pos_emb_ref(timestep, num_steps=num_steps, dim=dim)

    assert out.shape == (B, dim)
    # Arguments reach ~rescale_steps (~4e3); fp32 argument reduction in sin and
    # the folded-in scaling differ from the XLA reference path by ~|arg|*eps,
    # so allow ~2e-3 absolute (results are in [-1, 1]).
    assert jnp.allclose(out, ref, atol=2e-3, rtol=0.0), "mismatch vs reference"

    print("KERNEL_OK")
</pallas_src>

<mosaic_0001>
module attributes {stable_mosaic.version = 11 : i64} {
  func.func @_kernel(%arg0: i32, %arg1: memref<8x1xi32, #tpu.memory_space<vmem>>, %arg2: memref<2x32xf32, #tpu.memory_space<vmem>>, %arg3: memref<8x32xf32, #tpu.memory_space<vmem>>) attributes {dimension_semantics = [#tpu.dimension_semantics<parallel>], iteration_bounds = array<i64: 1>, scalar_prefetch = 0 : i64, scratch_operands = 0 : i64, tpu.core_type = #tpu.core_type<tc>, window_params = [{transform_indices = @transform_0, window_bounds = array<i64: 8, 1>}, {pipeline_mode = #tpu.pipeline_mode<synchronous>, transform_indices = @transform_1, window_bounds = array<i64: 2, 32>}, {transform_indices = @transform_2, window_bounds = array<i64: 8, 32>}]} {
    %c0 = arith.constant 0 : index
    %c0_0 = arith.constant 0 : index
    %0 = vector.load %arg1[%c0, %c0_0] : memref<8x1xi32, #tpu.memory_space<vmem>>, vector<8x1xi32>
    %1 = arith.sitofp %0 : vector<8x1xi32> to vector<8x1xf32>
    %c0_1 = arith.constant 0 : index
    %c0_2 = arith.constant 0 : index
    %2 = vector.load %arg2[%c0_1, %c0_2] : memref<2x32xf32, #tpu.memory_space<vmem>>, vector<2x32xf32>
    %3 = vector.extract_strided_slice %2 {offsets = [0, 0], sizes = [1, 32], strides = [1, 1]} : vector<2x32xf32> to vector<1x32xf32>
    %4 = vector.extract_strided_slice %2 {offsets = [1, 0], sizes = [1, 32], strides = [1, 1]} : vector<2x32xf32> to vector<1x32xf32>
    %5 = vector.broadcast %1 : vector<8x1xf32> to vector<8x32xf32>
    %6 = vector.broadcast %3 : vector<1x32xf32> to vector<8x32xf32>
    %7 = arith.mulf %5, %6 : vector<8x32xf32>
    %8 = vector.broadcast %4 : vector<1x32xf32> to vector<8x32xf32>
    %9 = arith.addf %7, %8 : vector<8x32xf32>
    %10 = math.sin %9 : vector<8x32xf32>
    %c0_3 = arith.constant 0 : index
    %c0_4 = arith.constant 0 : index
    %11 = vector.load %arg3[%c0_3, %c0_4] : memref<8x32xf32, #tpu.memory_space<vmem>>, vector<8x32xf32>
    tpu.vector_store %arg3[%c0_3, %c0_4], %10 {strides = array<i32>} : memref<8x32xf32, #tpu.memory_space<vmem>>, vector<8x32xf32>,
    return
  }
  func.func @transform_0(%arg0: i32) -> (i32, i32) {
    %c0_i32 = arith.constant 0 : i32
    %c0_i32_0 = arith.constant 0 : i32
    return %arg0, %c0_i32 : i32, i32
  }
  func.func @transform_1(%arg0: i32) -> (i32, i32) {
    %c0_i32 = arith.constant 0 : i32
    %c0_i32_0 = arith.constant 0 : i32
    %c0_i32_1 = arith.constant 0 : i32
    return %c0_i32, %c0_i32_0 : i32, i32
  }
  func.func @transform_2(%arg0: i32) -> (i32, i32) {
    %c0_i32 = arith.constant 0 : i32
    %c0_i32_0 = arith.constant 0 : i32
    return %arg0, %c0_i32 : i32, i32
  }
}

</mosaic_0001>

<bundles_post_ra>
// kernel: tpu_custom_call.1
= control target key start
LH: loop header
LB: loop body
LE: loop exit
PB: predicated region body
PF: predicated region fallthrough
CT: control target
= control target key end

     0   :  { %v193_v1 = vmov 0   ;;  %s246_s0 = inlined_call_operand.vmem [shape: s32[8,1], index: 0, kind: input, shape index: {}]   ;;  %s247_s1 = inlined_call_operand.vmem [shape: f32[2,32], index: 1, kind: input, shape index: {}]   ;;  %s248_s2 = inlined_call_operand.hbm [shape: f32[8,32], index: 2, kind: output, shape index: {}]  }
   0x1   :  { %v12_v0 = vld [vmem:[%s246_s0] sm:$0xff]  ;;  %166 = vset.pattern.permute.xlu0 %v193_v1 }
   0x2   :  { %v13_v2 = vcvt.s32.f32 %v12_v0 }
   0x3   :  { %7 = vsyncpa [#allocation3], 0  ;;  %v20_v3 = vlaneseq  ;;  %v14_v6 = vld [vmem:[%s247_s1] sm:$0x3]  ;;  %v194_v24 = vmov 2102212464  }
   0x4   :  { %17 = vperm.xlu0 %166, %v13_v2   ;;  %v195_v26 = vmov 920167782   ;;  %v196_v30 = vmov 1326507024   ;;  %v197_v32 = vmov 683565275  }
   0x5   :  { %v21_v4 = vshrl.u32 %v20_v3, 7  ;;  %v198_v34 = vmov 2475754826   ;;  %v199_v37 = vmov 2131351028   ;;  %s200_s0 = smov [#allocation2]  }
   0x6   :  { %s142_s1 = sshll.u32 %s200_s0, 4  ;;  %vm134_vm12 = vcmask 261120   ;;  %s143_s1 = int_to_ptr.vmem [resolvable:$true] %s142_s1 }
   0x7   :  { %v22_v5 = vsub.s32 0, %v21_v4  ;;  %v27_v7 = vsub.s32 1, %v21_v4  ;;  %s171_s13 = scalar_lea.vmem %s143_s1, 128  ;;  %p176_p1 = scmp.lt.s32.totalorder %s143_s1, %s143_s1 }
   0x8   :  { %p172_p0 = scmp.ne.s32.totalorder %s143_s1, %s171_s13  ;;  %p177_p2 = scmp.lt.s32.totalorder %s171_s13, %s171_s13 }
   0x9   :  { %v23_v8 = vrot.slane %v14_v6, %v22_v5  ;;  %v28_v9 = vrot.slane %v14_v6, %v27_v7 }
   0xa   :  { %p178_p3 = por %p177_p2, %p176_p1 }
   0xc   :  { %p179_p4 = pnand %p178_p3, %p172_p0 }
  0x7f   :  { %v18_v10 = vpop.permute.xlu0 %17 }
  0x80   :  { %v24_v11 = vmul.f32 %v23_v8, %v18_v10 }
  0x82   :  { %v222_v12 = vadd.f32 %v28_v9, %v24_v11 }
  0x84   :  { %v33_v13 = vand.u32 2139095040, %v222_v12  ;;  %v30_v14 = vand.u32 2147483647, %v222_v12  ;;  %vm32_vm7 = vcmp.lt.s32.totalorder %v222_v12, 0  ;;  %vm122_vm13 = vweird.f32 %v222_v12 }
  0x86   :  { %v34_v15 = vshrl.u32 %v33_v13, 23  ;;  %v37_v17 = vand.u32 8388607, %v30_v14  ;;  %vm31_vm8 = vcmp.le.f32.partialorder %v30_v14, 0.7853982 }
  0x88   :  { %v150_v16 = vadd.s32 4294967169, %v34_v15  ;;  %v38_v20 = vor.u32 8388608, %v37_v17 }
  0x8a   :  { %v40_v18 = vadd.s32 1, %v150_v16  ;;  %v78_v28 = vshll.u32 %v38_v20, 8 }
  0x8c   :  { %vm41_vm0 = vcmp.gt.s32.totalorder %v40_v18, 0 }
  0x8d   :  { %v42_v19 = vsel %vm41_vm0, %v40_v18, 0 }
  0x8e   :  { %v44_v21 = vand.u32 31, %v42_v19  ;;  %v43_v22 = vshrl.u32 %v42_v19, 5 }
  0x90   :  { %v45_v23 = vsub.s32 32, %v44_v21  ;;  %v56_v25 = vshll.u32 %v194_v24, %v44_v21  ;;  %v59_v27 = vshll.u32 %v195_v26, %v44_v21  ;;  %v47_v33 = vshll.u32 %v197_v32, %v44_v21 }
  0x91   :  { %v50_v36 = vshll.u32 %v198_v34, %v44_v21  ;;  %v53_v39 = vshll.u32 %v199_v37, %v44_v21  ;;  %vm65_vm1 = vcmp.lt.s32.totalorder %v43_v22, 4  ;;  %vm62_vm2 = vcmp.lt.s32.totalorder %v43_v22, 1 }
  0x92   :  { %v57_v29 = vshrl.u32 %v195_v26, %v45_v23  ;;  %v60_v31 = vshrl.u32 %v196_v30, %v45_v23  ;;  %v48_v35 = vshrl.u32 %v198_v34, %v45_v23  ;;  %v51_v38 = vshrl.u32 %v199_v37, %v45_v23 }
  0x93   :  { %v54_v40 = vshrl.u32 %v194_v24, %v45_v23  ;;  %v46_v44 = vshrl.u32 %v197_v32, %v45_v23  ;;  %vm63_vm3 = vcmp.lt.s32.totalorder %v43_v22, 2  ;;  %vm64_vm4 = vcmp.lt.s32.totalorder %v43_v22, 3 }
  0x94   :  { %v58_v41 = vor.u32 %v57_v29, %v56_v25  ;;  %v61_v42 = vor.u32 %v60_v31, %v59_v27  ;;  %v49_v43 = vor.u32 %v48_v35, %v47_v33  ;;  %v52_v45 = vor.u32 %v51_v38, %v50_v36 }
  0x95   :  { %v55_v46 = vor.u32 %v54_v40, %v53_v39 }
  0x96   :  { %v71_v47 = vsel %vm65_vm1, %v58_v41, 920167782  ;;  %v75_v48 = vsel %vm65_vm1, %v61_v42, 1326507024  ;;  %v70_v50 = vsel %vm62_vm2, %v49_v43, %v52_v45  ;;  %v66_v53 = vsel %vm62_vm2, %v46_v44, %v49_v43 }
  0x97   :  { %v67_v49 = vsel %vm65_vm1, %v55_v46, 2102212464  ;;  %v72_v51 = vsel %vm64_vm4, %v55_v46, %v71_v47  ;;  %v74_v52 = vsel %vm62_vm2, %v52_v45, %v55_v46  ;;  %v76_v56 = vsel %vm64_vm4, %v58_v41, %v75_v48 }
  0x98   :  { %v68_v54 = vsel %vm64_vm4, %v52_v45, %v67_v49  ;;  %v73_v55 = vsel %vm63_vm3, %v70_v50, %v72_v51  ;;  %v77_v57 = vsel %vm63_vm3, %v74_v52, %v76_v56 }
  0x99   :  { %v228_v58 = vmul.u32.u64.low %v78_v28, %v73_v55  ;;  %v229_v59 = vmul.u32.u64.high %v78_v28, %v73_v55, %v228_v58  ;;  %v231_v60 = vmul.u32.u64.low %v78_v28, %v77_v57  ;;  %v232_v61 = vmul.u32.u64.high %v78_v28, %v77_v57, %v231_v60 }
  0x9a   :  { %v69_v62 = vsel %vm63_vm3, %v66_v53, %v68_v54 }
  0x9b   :  { %v88_v63 = vadd.s32 1, %v229_v59  ;;  %v85_v0 = vmul.u32 %v78_v28, %v69_v62  ;;  %vm87_vm5 = vc.u32 %v232_v61, %v228_v58  ;;  %v86_v13 = vadd.s32 %v228_v58, %v232_v61 }
  0x9d   :  { %v89_v1 = vsel %vm87_vm5, %v88_v63, %v229_v59 }
  0x9e   :  { %v90_v2 = vadd.s32 %v89_v1, %v85_v0 }
  0xa0   :  { %v91_v3 = vadd.s32 536870912, %v90_v2 }
  0xa2   :  { %v92_v4 = vshrl.u32 %v91_v3, 30 }
  0xa4   :  { %v93_v5 = vshll.u32 %v92_v4, 30  ;;  %v116_v27 = vsub.s32 4, %v92_v4 }
  0xa6   :  { %v94_v6 = vsub.s32 %v90_v2, %v93_v5  ;;  %v117_v30 = vsel %vm32_vm7, %v116_v27, %v92_v4 }
  0xa7   :  { %v119_v31 = vsel %vm31_vm8, 0, %v117_v30 }
  0xa8   :  { %v96_v7 = vsub.s32 0, %v94_v6  ;;  %v123_v32 = vadd.s32 3, %v119_v31 }
  0xaa   :  { %v151_v8 = vmin.u32 %v96_v7, %v94_v6  ;;  %v124_v33 = vand.u32 3, %v123_v32 }
  0xac   :  { %v98_v9 = vclz %v151_v8  ;;  %vm129_vm9 = vcmp.eq.s32.totalorder %v124_v33, 2  ;;  %vm126_vm10 = vcmp.eq.s32.totalorder %v124_v33, 0  ;;  %vm125_vm11 = vcmp.lt.s32.totalorder %v124_v33, 2 }
  0xae   :  { %v152_v10 = vadd.s32 4294967294, %v98_v9 }
  0xb0   :  { %vm153_vm6 = vcmp.lt.s32.totalorder %v152_v10, 0 }
  0xb1   :  { %v101_v11 = vsel %vm153_vm6, 0, %v152_v10 }
  0xb2   :  { %v102_v15 = vsub.s32 32, %v101_v11  ;;  %v106_v16 = vsub.s32 4294967266, %v101_v11  ;;  %v103_v17 = vshll.u32 %v94_v6, %v101_v11 }
  0xb4   :  { %v104_v18 = vshrl.u32 %v86_v13, %v102_v15  ;;  %v107_v19 = vadd.s32 127, %v106_v16 }
  0xb6   :  { %v105_v20 = vor.u32 %v104_v18, %v103_v17  ;;  %v108_v21 = vshll.u32 %v107_v19, 23 }
  0xb8   :  { %v109_v22 = vor.u32 4788187, %v108_v21  ;;  %v112_v24 = vcvt.s32.f32 %v105_v20 }
  0xba   :  { %v110_v23 = vand.u32 2147483647, %v109_v22 }
  0xbc   :  { %v113_v25 = vmul.f32 %v112_v24, %v110_v23 }
  0xbe   :  { %v114_v26 = vxor.u32 2147483648, %v113_v25 }
  0xc0   :  { %v115_v28 = vsel %vm32_vm7, %v114_v26, %v113_v25 }
  0xc1   :  { %v118_v29 = vsel %vm31_vm8, %v222_v12, %v115_v28 }
  0xc2   :  { %167 = vcosq.f32 %v118_v29 }
  0xc3   :  { %169 = vsinq.f32 %v118_v29 }
  0xcf   :  { %v168_v34 = vpop.eup %167 }
  0xd0   :  { %v170_v35 = vpop.eup %169  ;;  %v130_v36 = vxor.u32 2147483648, %v168_v34 }
  0xd1   :  { %v127_v37 = vxor.u32 2147483648, %v170_v35 }
  0xd2   :  { %v131_v38 = vsel %vm129_vm9, %v130_v36, %v170_v35 }
  0xd3   :  { %v128_v14 = vsel %vm126_vm10, %v168_v34, %v127_v37 }
  0xd4   :  { %v132_v39 = vsel %vm125_vm11, %v128_v14, %v131_v38 }
  0xd5   :  { %v133_v40 = vsel %vm122_vm13, nan, %v132_v39 }
  0xd6   :  { %135 = vst.msk [vmem:[#allocation2] sm:$0xff] %vm134_vm12, %v133_v40 }
  0xd7   :  { %182 = shalt.err (!%p179_p4)
}
  0xd8   :  { %145 = dma.vmem_to_hbm [thread:$0]  %s143_s1, 128, %s248_s2, [#allocation3]  }
  0xd9   :  { %191 = dma.done.wait [#allocation3], 128  }
  0xda   :  { %192 = vsyncadd [#allocation3], 4294967168 }
  0xdb   :  { %149 = vsyncpa [#allocation3], 1 }

</bundles_post_ra>
